<compile_context>
chip_gen: v5e
topology: v5e:2x2
jax: 0.10.0
libtpu: 0.0.40
codegen_flags: <defaults>
</compile_context>

<pallas_src>
import jax
import jax.numpy as jnp
from jax.experimental import pallas as pl
from jax.experimental.pallas import tpu as pltpu


def _round_up(x, m):
    return ((x + m - 1) // m) * m


def rnn_seq_kernel(x_ref, h0_ref, wx_ref, wh_ref, b_ref, out_ref, hid_ref):
    """One RNN timestep; invoked once per grid step t.

    x_ref   : (B, I)        x_t, streamed per grid step
    h0_ref  : (B, H)        initial hidden (fetched once; used at t == 0)
    wx_ref  : (I, Hp + O)   fused [i2h | i2o] weights, input part (resident)
    wh_ref  : (H, Hp + O)   fused [i2h | i2o] weights, hidden part (resident)
    b_ref   : (1, Hp + O)   fused bias (resident)
    out_ref : (B, O)        log-softmax output for step t (streamed out)
    hid_ref : (B, H)        hidden state; VMEM-resident output block across
                            the whole grid, written back to HBM once at end
    """
    t = pl.program_id(0)
    H = hid_ref.shape[-1]
    O = out_ref.shape[-1]
    off = b_ref.shape[-1] - O          # 128-aligned start column of the logits

    @pl.when(t == 0)
    def _init():
        hid_ref[...] = h0_ref[...]

    x = x_ref[...]                      # (B, I)
    h = hid_ref[...]                    # (B, H)

    # Fused matmul: a single accumulated MXU result holds [hidden' | logits].
    z = (jnp.dot(x, wx_ref[...], preferred_element_type=jnp.float32)
         + jnp.dot(h, wh_ref[...], preferred_element_type=jnp.float32)
         + b_ref[...])                  # (B, Hp + O)

    new_h = z[:, :H]                    # tile-aligned slice (offset 0)
    logits = z[:, off:]                 # tile-aligned slice (offset % 128 == 0)

    # Numerically stable LogSoftmax(dim=1); exp/log ride the EUP slot.
    m = jnp.max(logits, axis=1, keepdims=True)
    shifted = logits - m
    lse = jnp.log(jnp.sum(jnp.exp(shifted), axis=1, keepdims=True))

    out_ref[...] = (shifted - lse).astype(out_ref.dtype)
    hid_ref[...] = new_h.astype(hid_ref.dtype)


def prepare_params(w_i2h, b_i2h, w_i2o, b_i2o):
    """One-time parameter re-layout (hoisted out of the per-step hot path).

    PyTorch layout (out_features, in_features) -> fused, transposed layout:
      columns [0 : H]       = i2h
      columns [Hp : Hp + O] = i2o   (Hp = round_up(H, 128) so the logits block
                                     starts on a lane-tile boundary)
    Split along in-features into an input part (I rows) and a hidden part
    (H rows) so the kernel never materializes cat([x, h]).
    """
    H, fan_in = w_i2h.shape
    O = w_i2o.shape[0]
    I = fan_in - H
    Hp = _round_up(H, 128)

    w_cat = jnp.zeros((fan_in, Hp + O), jnp.float32)
    w_cat = w_cat.at[:, :H].set(w_i2h.T.astype(jnp.float32))
    w_cat = w_cat.at[:, Hp:].set(w_i2o.T.astype(jnp.float32))
    b_cat = jnp.zeros((1, Hp + O), jnp.float32)
    b_cat = b_cat.at[0, :H].set(b_i2h.astype(jnp.float32))
    b_cat = b_cat.at[0, Hp:].set(b_i2o.astype(jnp.float32))

    return w_cat[:I], w_cat[I:], b_cat   # wx (I, Hp+O), wh (H, Hp+O), b (1, Hp+O)


def rnn_sequence_forward(xs, h0, wx, wh, b, output_size):
    """Run T RNN steps inside a single pallas_call.

    xs : (T, B, I), h0 : (B, H).
    Returns (log-prob outputs (T, B, O), final hidden (B, H)).
    """
    T, B, I = xs.shape
    H = h0.shape[1]
    O = output_size
    HOp = b.shape[1]

    flops = 2 * T * B * (I + H) * (H + O)
    transcendentals = T * B * (O + 1)
    bytes_accessed = 4 * (xs.size + h0.size + wx.size + wh.size + b.size
                          + T * B * O + B * H)

    out, h_final = pl.pallas_call(
        rnn_seq_kernel,
        out_shape=(
            jax.ShapeDtypeStruct((T, B, O), jnp.float32),
            jax.ShapeDtypeStruct((B, H), jnp.float32),
        ),
        grid=(T,),
        in_specs=[
            pl.BlockSpec((None, B, I), lambda t: (t, 0, 0)),   # x_t streamed
            pl.BlockSpec((B, H), lambda t: (0, 0)),            # h0 (fetched once)
            pl.BlockSpec((I, HOp), lambda t: (0, 0)),          # Wx resident
            pl.BlockSpec((H, HOp), lambda t: (0, 0)),          # Wh resident
            pl.BlockSpec((1, HOp), lambda t: (0, 0)),          # bias resident
        ],
        out_specs=(
            pl.BlockSpec((None, B, O), lambda t: (t, 0, 0)),   # out_t streamed
            pl.BlockSpec((B, H), lambda t: (0, 0)),            # hidden resident
        ),
        compiler_params=pltpu.CompilerParams(
            dimension_semantics=("arbitrary",)),               # time is sequential
        cost_estimate=pl.CostEstimate(
            flops=flops,
            transcendentals=transcendentals,
            bytes_accessed=bytes_accessed),
    )(xs, h0, wx, wh, b)
    return out, h_final


def rnn_forward(x, h, wx, wh, b, output_size):
    """Single-step forward with the module's exact semantics:
    returns (log_softmax(i2o(cat(x, h))), i2h(cat(x, h)))."""
    out, h_new = rnn_sequence_forward(x[None], h, wx, wh, b, output_size)
    return out[0], h_new


if __name__ == "__main__":
    # Small, deterministic config consistent with the module's forward.
    batch = 2
    input_size = 16
    hidden_size = 32
    output_size = 8
    seq_len = 8

    key = jax.random.PRNGKey(0)
    k_x, k_wh, k_bh, k_wo, k_bo = jax.random.split(key, 5)

    xs = jax.random.normal(k_x, (seq_len, batch, input_size), dtype=jnp.float32)
    h0 = jnp.zeros((batch, hidden_size), dtype=jnp.float32)   # initHidden()

    fan_in = input_size + hidden_size
    bound = 1.0 / float(fan_in) ** 0.5
    # PyTorch-layout weights: (out_features, in_features)
    w_i2h = jax.random.uniform(k_wh, (hidden_size, fan_in),
                               minval=-bound, maxval=bound, dtype=jnp.float32)
    b_i2h = jax.random.uniform(k_bh, (hidden_size,),
                               minval=-bound, maxval=bound, dtype=jnp.float32)
    w_i2o = jax.random.uniform(k_wo, (output_size, fan_in),
                               minval=-bound, maxval=bound, dtype=jnp.float32)
    b_i2o = jax.random.uniform(k_bo, (output_size,),
                               minval=-bound, maxval=bound, dtype=jnp.float32)

    # One-time parameter re-layout (not in the per-step path).
    wx, wh, b = prepare_params(w_i2h, b_i2h, w_i2o, b_i2o)

    # Fused multi-step forward: whole sequence in one pallas_call.
    out_seq, h_final = rnn_sequence_forward(xs, h0, wx, wh, b, output_size)
    # Single-step forward (exact module forward signature/semantics).
    out_step, h_step = rnn_forward(xs[0], h0, wx, wh, b, output_size)
    jax.block_until_ready((out_seq, h_final, out_step, h_step))

    # Plain-JAX reference replicating the PyTorch module step by step.
    def ref_cell(x, h):
        comb = jnp.concatenate([x, h], axis=1)
        h_new = comb @ w_i2h.T + b_i2h
        logits = comb @ w_i2o.T + b_i2o
        return jax.nn.log_softmax(logits, axis=1), h_new

    ref_outs = []
    h_ref = h0
    for t in range(seq_len):
        o_t, h_ref = ref_cell(xs[t], h_ref)
        ref_outs.append(o_t)
    ref_outs = jnp.stack(ref_outs)

    assert jnp.allclose(out_seq, ref_outs, atol=1e-4, rtol=1e-4), "sequence output mismatch"
    assert jnp.allclose(h_final, h_ref, atol=1e-4, rtol=1e-4), "final hidden mismatch"

    ref_o0, ref_h0 = ref_cell(xs[0], h0)
    assert jnp.allclose(out_step, ref_o0, atol=1e-4, rtol=1e-4), "step output mismatch"
    assert jnp.allclose(h_step, ref_h0, atol=1e-4, rtol=1e-4), "step hidden mismatch"

    print("KERNEL_OK")
</pallas_src>

<mosaic_0001>
module attributes {stable_mosaic.version = 11 : i64} {
  func.func @rnn_seq_kernel(%arg0: i32, %arg1: memref<1x2x16xf32, #tpu.memory_space<vmem>>, %arg2: memref<2x32xf32, #tpu.memory_space<vmem>>, %arg3: memref<16x136xf32, #tpu.memory_space<vmem>>, %arg4: memref<32x136xf32, #tpu.memory_space<vmem>>, %arg5: memref<1x136xf32, #tpu.memory_space<vmem>>, %arg6: memref<1x2x8xf32, #tpu.memory_space<vmem>>, %arg7: memref<2x32xf32, #tpu.memory_space<vmem>>) attributes {dimension_semantics = [#tpu.dimension_semantics<arbitrary>], iteration_bounds = array<i64: 8>, scalar_prefetch = 0 : i64, scratch_operands = 0 : i64, tpu.core_type = #tpu.core_type<tc>, window_params = [{transform_indices = @transform_0, window_bounds = array<i64: 1, 2, 16>}, {pipeline_mode = #tpu.pipeline_mode<synchronous>, transform_indices = @transform_1, window_bounds = array<i64: 2, 32>}, {pipeline_mode = #tpu.pipeline_mode<synchronous>, transform_indices = @transform_2, window_bounds = array<i64: 16, 136>}, {pipeline_mode = #tpu.pipeline_mode<synchronous>, transform_indices = @transform_3, window_bounds = array<i64: 32, 136>}, {pipeline_mode = #tpu.pipeline_mode<synchronous>, transform_indices = @transform_4, window_bounds = array<i64: 1, 136>}, {transform_indices = @transform_5, window_bounds = array<i64: 1, 2, 8>}, {pipeline_mode = #tpu.pipeline_mode<synchronous>, transform_indices = @transform_6, window_bounds = array<i64: 2, 32>}]} {
    %c0_i32 = arith.constant 0 : i32
    %0 = arith.cmpi eq, %arg0, %c0_i32 : i32
    %1 = arith.extui %0 : i1 to i32
    %c0_i32_0 = arith.constant 0 : i32
    %2 = arith.cmpi ne, %1, %c0_i32_0 : i32
    scf.if %2 {
      %c0_19 = arith.constant 0 : index
      %c0_20 = arith.constant 0 : index
      %30 = vector.load %arg2[%c0_19, %c0_20] : memref<2x32xf32, #tpu.memory_space<vmem>>, vector<2x32xf32>
      %c0_21 = arith.constant 0 : index
      %c0_22 = arith.constant 0 : index
      %31 = vector.load %arg7[%c0_21, %c0_22] : memref<2x32xf32, #tpu.memory_space<vmem>>, vector<2x32xf32>
      tpu.vector_store %arg7[%c0_21, %c0_22], %30 {strides = array<i32>} : memref<2x32xf32, #tpu.memory_space<vmem>>, vector<2x32xf32>,
    } else {
    }
    %c0 = arith.constant 0 : index
    %c0_1 = arith.constant 0 : index
    %c0_2 = arith.constant 0 : index
    %3 = vector.load %arg1[%c0, %c0_1, %c0_2] : memref<1x2x16xf32, #tpu.memory_space<vmem>>, vector<1x2x16xf32>
    %4 = vector.shape_cast %3 : vector<1x2x16xf32> to vector<2x16xf32>
    %c0_3 = arith.constant 0 : index
    %c0_4 = arith.constant 0 : index
    %5 = vector.load %arg7[%c0_3, %c0_4] : memref<2x32xf32, #tpu.memory_space<vmem>>, vector<2x32xf32>
    %c0_5 = arith.constant 0 : index
    %c0_6 = arith.constant 0 : index
    %6 = vector.load %arg3[%c0_5, %c0_6] : memref<16x136xf32, #tpu.memory_space<vmem>>, vector<16x136xf32>
    %cst = arith.constant dense<0.000000e+00> : vector<2x136xf32>
    %7 = tpu.matmul %4, %6, %cst {dimension_numbers = #tpu.dot_dimension_numbers<[1], [0], [0], [1], [0, 0, 1, 1], [], []>} : vector<2x16xf32>, vector<16x136xf32>, vector<2x136xf32> -> vector<2x136xf32>
    %c0_7 = arith.constant 0 : index
    %c0_8 = arith.constant 0 : index
    %8 = vector.load %arg4[%c0_7, %c0_8] : memref<32x136xf32, #tpu.memory_space<vmem>>, vector<32x136xf32>
    %cst_9 = arith.constant dense<0.000000e+00> : vector<2x136xf32>
    %9 = tpu.matmul %5, %8, %cst_9 {dimension_numbers = #tpu.dot_dimension_numbers<[1], [0], [0], [1], [0, 0, 1, 1], [], []>} : vector<2x32xf32>, vector<32x136xf32>, vector<2x136xf32> -> vector<2x136xf32>
    %10 = arith.addf %7, %9 : vector<2x136xf32>
    %c0_10 = arith.constant 0 : index
    %c0_11 = arith.constant 0 : index
    %11 = vector.load %arg5[%c0_10, %c0_11] : memref<1x136xf32, #tpu.memory_space<vmem>>, vector<1x136xf32>
    %12 = vector.broadcast %11 : vector<1x136xf32> to vector<2x136xf32>
    %13 = arith.addf %10, %12 : vector<2x136xf32>
    %14 = vector.extract_strided_slice %13 {offsets = [0, 0], sizes = [2, 32], strides = [1, 1]} : vector<2x136xf32> to vector<2x32xf32>
    %15 = vector.extract_strided_slice %13 {offsets = [0, 128], sizes = [2, 8], strides = [1, 1]} : vector<2x136xf32> to vector<2x8xf32>
    %cst_12 = arith.constant dense<0xFF800000> : vector<2xf32>
    %16 = vector.multi_reduction <maximumf>, %15, %cst_12 [1] : vector<2x8xf32> to vector<2xf32>
    %17 = vector.shape_cast %16 : vector<2xf32> to vector<2x1xf32>
    %18 = vector.broadcast %17 : vector<2x1xf32> to vector<2x8xf32>
    %19 = arith.subf %15, %18 : vector<2x8xf32>
    %20 = math.exp %19 : vector<2x8xf32>
    %cst_13 = arith.constant dense<0.000000e+00> : vector<2xf32>
    %21 = vector.multi_reduction <add>, %20, %cst_13 [1] : vector<2x8xf32> to vector<2xf32>
    %22 = vector.shape_cast %21 : vector<2xf32> to vector<2x1xf32>
    %23 = math.log %22 : vector<2x1xf32>
    %24 = vector.broadcast %23 : vector<2x1xf32> to vector<2x8xf32>
    %25 = arith.subf %19, %24 : vector<2x8xf32>
    %c0_14 = arith.constant 0 : index
    %c0_15 = arith.constant 0 : index
    %c0_16 = arith.constant 0 : index
    %26 = vector.load %arg6[%c0_14, %c0_15, %c0_16] : memref<1x2x8xf32, #tpu.memory_space<vmem>>, vector<1x2x8xf32>
    %27 = vector.shape_cast %26 : vector<1x2x8xf32> to vector<2x8xf32>
    %28 = vector.shape_cast %25 : vector<2x8xf32> to vector<1x2x8xf32>
    tpu.vector_store %arg6[%c0_14, %c0_15, %c0_16], %28 {strides = array<i32>} : memref<1x2x8xf32, #tpu.memory_space<vmem>>, vector<1x2x8xf32>,
    %c0_17 = arith.constant 0 : index
    %c0_18 = arith.constant 0 : index
    %29 = vector.load %arg7[%c0_17, %c0_18] : memref<2x32xf32, #tpu.memory_space<vmem>>, vector<2x32xf32>
    tpu.vector_store %arg7[%c0_17, %c0_18], %14 {strides = array<i32>} : memref<2x32xf32, #tpu.memory_space<vmem>>, vector<2x32xf32>,
    return
  }
  func.func @transform_0(%arg0: i32) -> (i32, i32, i32) {
    %c0_i32 = arith.constant 0 : i32
    %c0_i32_0 = arith.constant 0 : i32
    %c0_i32_1 = arith.constant 0 : i32
    return %arg0, %c0_i32, %c0_i32_0 : i32, i32, i32
  }
  func.func @transform_1(%arg0: i32) -> (i32, i32) {
    %c0_i32 = arith.constant 0 : i32
    %c0_i32_0 = arith.constant 0 : i32
    %c0_i32_1 = arith.constant 0 : i32
    return %c0_i32, %c0_i32_0 : i32, i32
  }
  func.func @transform_2(%arg0: i32) -> (i32, i32) {
    %c0_i32 = arith.constant 0 : i32
    %c0_i32_0 = arith.constant 0 : i32
    %c0_i32_1 = arith.constant 0 : i32
    return %c0_i32, %c0_i32_0 : i32, i32
  }
  func.func @transform_3(%arg0: i32) -> (i32, i32) {
    %c0_i32 = arith.constant 0 : i32
    %c0_i32_0 = arith.constant 0 : i32
    %c0_i32_1 = arith.constant 0 : i32
    return %c0_i32, %c0_i32_0 : i32, i32
  }
  func.func @transform_4(%arg0: i32) -> (i32, i32) {
    %c0_i32 = arith.constant 0 : i32
    %c0_i32_0 = arith.constant 0 : i32
    %c0_i32_1 = arith.constant 0 : i32
    return %c0_i32, %c0_i32_0 : i32, i32
  }
  func.func @transform_5(%arg0: i32) -> (i32, i32, i32) {
    %c0_i32 = arith.constant 0 : i32
    %c0_i32_0 = arith.constant 0 : i32
    %c0_i32_1 = arith.constant 0 : i32
    return %arg0, %c0_i32, %c0_i32_0 : i32, i32, i32
  }
  func.func @transform_6(%arg0: i32) -> (i32, i32) {
    %c0_i32 = arith.constant 0 : i32
    %c0_i32_0 = arith.constant 0 : i32
    %c0_i32_1 = arith.constant 0 : i32
    return %c0_i32, %c0_i32_0 : i32, i32
  }
}

</mosaic_0001>

<bundles_post_ra>
// kernel: tpu_custom_call.1
= control target key start
LH: loop header
LB: loop body
LE: loop exit
PB: predicated region body
PF: predicated region fallthrough
CT: control target
= control target key end

     0   :  { %12 = vsyncpa [#allocation3], 0  ;;  %s1154_s0 = inlined_call_operand.hbm [shape: f32[8,2,16], index: 0, kind: input, shape index: {}]   ;;  %s1155_s1 = inlined_call_operand.hbm [shape: f32[2,32], index: 1, kind: input, shape index: {}]   ;;  %s1156_s2 = inlined_call_operand.hbm [shape: f32[16,136], index: 2, kind: input, shape index: {}]   ;;  %s1157_s3 = inlined_call_operand.hbm [shape: f32[32,136], index: 3, kind: input, shape index: {}]   ;;  %s1158_s4 = inlined_call_operand.vmem [shape: f32[1,136], index: 4, kind: input, shape index: {}]   ;;  %s1159_s5 = inlined_call_operand.hbm [shape: f32[8,2,8], index: 5, kind: output, shape index: {0}]   ;;  %s1160_s6 = inlined_call_operand.hbm [shape: f32[2,32], index: 6, kind: output, shape index: {1}]  }
   0x1   :  { %14 = vsyncpa [#allocation3 + $0x1], 0 }
   0x2   :  { %15 = vsyncpa [#allocation6], 0 }
   0x3   :  { %16 = vsyncpa [#allocation9], 0 }
   0x4   :  { %17 = vsyncpa [#allocation4], 0 }
   0x5   :  { %19 = vsyncpa [#allocation4 + $0x1], 0 }
   0x6   :  { %20 = vsyncpa [#allocation12], 0  ;;  %s972_s21 = smov 0   ;;  %s974_s22 = smov 0  }
   0x7   :  { %s976_s23 = smov 0   ;;  %s978_s24 = smov 0  }
   0x8 LB: > { %s993_s25 = sadd.s32 4294967295, %s929_s24   ;;  %s588_s26 = sadd.s32 4294967294, %s929_s24   ;;  %s929_s24 = sphi %s978_s24, %s1175_s24   ;;  %s925_s23 = sphi %s976_s23, %s1174_s23   ;;  %s921_s22 = sphi %s974_s22, %s1173_s22   ;;  %s917_s21 = sphi %s972_s21, %s1172_s21  }
   0x9   : > { %p46_p0 = scmp.ne.s32.totalorder %s921_s22, %s917_s21  ;;  %p47_p1 = scmp.eq.s32.totalorder %s993_s25, 0 }
   0xa   : > { %p1161_p2 = scmp.eq.s32.totalorder %s993_s25, 7  ;;  %p160_p3 = scmp.eq.s32.totalorder %s588_s26, 7 }
   0xb   : > { %p1002_p4 = por %p47_p1, %p46_p0  ;;  %p589_p5 = scmp.ge.s32.totalorder %s929_s24, 1 }
   0xc   : > { %p1007_p6 = por %p160_p3, %p46_p0  ;;  %p188_p7 = scmp.lt.s32.totalorder %s929_s24, 9 }
   0xd   : > { %s200_s7 = sshll.u32 %s1155_s1, 4  ;;  %s931_s9 = smov [#allocation5]   ;;  %s201_s7 = int_to_ptr.hbm [resolvable:$true] %s200_s7 }
   0xe   : > { %p1016_p9 = pnand %p589_p5, %p188_p7  ;;  %s202_s10 = sshll.u32 %s931_s9, 4  ;;  %s203_s10 = int_to_ptr.vmem [resolvable:$true] %s202_s10 }
   0xf   : > { %s211_s13 = sshll.u32 %s1156_s2, 4  ;;  %s932_s15 = smov [#allocation7]   ;;  %s212_s13 = int_to_ptr.hbm [resolvable:$true] %s211_s13 }
  0x10   : > { %p633_p10 = pneg %p1016_p9  ;;  %s213_s16 = sshll.u32 %s932_s15, 4  ;;  %s214_s16 = int_to_ptr.vmem [resolvable:$true] %s213_s16 }
  0x11   : > { %s933_s17 = smov 256   ;;  %s934_s18 = smov 16  }
  0x12   : > { %p1027_p11 = pnand %p633_p10, %p47_p1  ;;  %s225_s26 = sshll.u32 %s1157_s3, 4  ;;  %s226_s26 = int_to_ptr.hbm [resolvable:$true] %s225_s26 }
  0x13   : > { %s935_s29 = smov [#allocation8]   ;;  %p40_p13 = scmp.ne.s32.totalorder %s925_s23, %s921_s22 }
  0x14   : > { %636 = dma.hbm_to_vmem [thread:$0]  (!%p1027_p11), %s201_s7, 32, %s203_s10, [#allocation6]  }
  0x15   : > { %639 = dma.hbm_to_vmem [thread:$0]  (!%p1027_p11), %s212_s13, 512, %s214_s16, [#allocation6], %s933_s17, %s933_s17, %s934_s18  }
  0x16   : > { %s227_s30 = sshll.u32 %s935_s29, 4  ;;  %s1041_s7 = sadd.s32 1, %s929_s24   ;;  %s228_s30 = int_to_ptr.vmem [resolvable:$true] %s227_s30 }
  0x17   : > { %642 = dma.hbm_to_vmem [thread:$0]  (!%p1027_p11), %s226_s26, 1024, %s228_s30, [#allocation9], %s933_s17, %s933_s17, %s934_s18  }
  0x18   : > { %s30_s9 = ssub.s32 %s929_s24, %s1041_s7  ;;  %s33_s10 = sadd.s32 1, %s925_s23 }
  0x19   : > { %p31_p12 = scmp.eq.s32.totalorder %s30_s9, 0  ;;  %p41_p0 = scmp.eq.s32.totalorder %s929_s24, 0 }
  0x1a   : > { %p1054_p3 = por %p1161_p2, %p40_p13  ;;  %p654_p5 = scmp.lt.s32.totalorder %s929_s24, 8 }
  0x1b   : > { %s1050_s11 = scalar_select %p31_p12, %s925_s23, %s33_s10  }
  0x1c   : > { %s244_s13 = sand.u32 1, %s925_s23   ;;  %s595_s15 = sshll.u32 %s929_s24, 1 }
  0x1d   : > { %p42_p7 = por %p41_p0, %p40_p13  ;;  %s594_s14 = sshll.u32 %s244_s13, 1 }
  0x1e   : > { %s252_s18 = scalar_lea.hbm %s1154_s0, %s595_s15  ;;  %s248_s20 = scalar_lea.vmem [#allocation2], %s594_s14 }
  0x1f   : > { %s254_s19 = sshll.u32 %s252_s18, 4  ;;  %s256_s26 = sshll.u32 %s248_s20, 4  ;;  %s255_s19 = int_to_ptr.hbm [resolvable:$true] %s254_s19  ;;  %s257_s26 = int_to_ptr.vmem [resolvable:$true] %s256_s26 }
  0x20   : > { %p1064_p10 = pnand %p654_p5, %p42_p7  ;;  %s245_s30 = scalar_lea.sflag [#allocation3], %s244_s13 }
  0x21   : > { %s793_s9 = sshra.s32 %s255_s19, 4  ;;  %s800_s14 = scalar_lea.hbm %s1154_s0, 16  ;;  %s794_s9 = int_to_ptr.hbm [resolvable:$true] %s793_s9 }
  0x22   : > { %s795_s10 = scalar_lea.hbm %s794_s9, 2  ;;  %p797_p12 = pneg %p1064_p10 }
  0x23   : > { %p796_p11 = scmp.ne.s32.totalorder %s794_s9, %s795_s10  ;;  %p801_p5 = scmp.lt.s32.totalorder %s794_s9, %s1154_s0 }
  0x24   : > { %p802_p7 = scmp.lt.s32.totalorder %s800_s14, %s795_s10 }
  0x25   : > { %p798_p13 = pnand %p797_p12, %p796_p11 }
  0x26   : > { %p803_p2 = por %p802_p7, %p801_p5 }
  0x27   : > { %p799_p0 = pneg %p798_p13 }
  0x29   : > { %p804_p8 = pnand %p803_p2, %p799_p0 }
  0x2b   : > { %807 = shalt.err (!%p804_p8)
}
  0x2c   : > { %646 = dma.hbm_to_vmem [thread:$0]  (!%p1064_p10), %s255_s19, 32, %s257_s26, %s245_s30  }
  0x2d   : > { %265 = sbr.rel (%p1016_p9) target bundleno = 468 (0x1d4), region = 40  ;;  %s1081_s13 = sand.u32 (!%p1016_p9), 1, %s921_s22  }
  0x2e   : > { %s597_s20 = sshll.u32 (!%p1016_p9), %s1081_s13, 1  ;;  %s268_s15 = scalar_lea.sflag (!%p1016_p9), [#allocation3], %s1081_s13 }
  0x2f   : > { %s271_s16 = scalar_lea.vmem (!%p1016_p9), [#allocation2], %s597_s20 }
  0x32   : > { %896 = dma.done.wait (%p1002_p4), %s268_s15, 32  }
  0x33   : > { %898 = vsyncadd (%p1002_p4), %s268_s15, 4294967264 }
  0x34   : > { %900 = dma.done.wait (%p47_p1), [#allocation6], 544  }
  0x35   : > { %902 = vsyncadd (%p47_p1), [#allocation6], 4294966752 }
  0x36   : > { %904 = dma.done.wait (%p47_p1), [#allocation9], 1024  }
  0x37   : > { %906 = vsyncadd (%p47_p1), [#allocation9], 4294966272  ;;  %s1097_s8 = scalar_lea.vmem [#allocation10], %s597_s20  ;;  %p1168_p2 = scmp.ne.s32.totalorder %s993_s25, 0 }
  0x39   : > { %319 = sbr.rel (%p1168_p2) target bundleno = 64 (0x40), region = 60 }
  0x3e   : > { %v320_v0 = vld [vmem:[#allocation5] sm:$0x3]  ;;  %vm321_vm0 = vcmask 254976  }
  0x3f   : > { %322 = vst.msk [vmem:[#allocation11] sm:$0x3] %vm321_vm0, %v320_v0 }
  0x40 PF: > { %v328_v1 = vld [vmem:[#allocation7 + $0x18] sm:$0xff]  ;;  %v326_v3 = vld [vmem:[#allocation7 + $0x8] sm:$0xff]  ;;  %vm381_vm1 = vcmask 130048   ;;  %vm337_vm2 = vcmask 261120   ;;  %vm433_vm3 = vcmask 58368   ;;  %v327_v16 = vld [vmem:[#allocation7 + $0x10] sm:$0xff] }
  0x41   : > { %v336_v2 = vld [vmem:[#allocation8 + $0x38] sm:$0xff]  ;;  %419 = vmatpush.msra.mxu3 %v328_v1  ;;  %v334_v5 = vld [vmem:[#allocation8 + $0x28] sm:$0xff]  ;;  %399 = vmatpush.msra.mxu2 %v327_v16  ;;  %v335_v17 = vld [vmem:[#allocation8 + $0x30] sm:$0xff]  ;;  %s936_s26 = smov [#allocation11]   ;;  %s476_s10 = sshll.u32 %s1160_s6, 4  ;;  %vm447_vm4 = vcmask 254976   ;;  %s477_s10 = int_to_ptr.hbm [resolvable:$true] %s476_s10 }
  0x42   : > { %373 = vmatpush.msra.mxu1 %v336_v2  ;;  %v323_v4 = vld [vmem:[%s271_s16] sm:$0x3]  ;;  %v330_v7 = vld [vmem:[#allocation8 + $0x8] sm:$0xff]  ;;  %v325_v18 = vld [vmem:[#allocation7] sm:$0xff]  ;;  %353 = vmatpush.msra.mxu0 %v335_v17  ;;  %s474_s29 = sshll.u32 %s936_s26, 4  ;;  %p1169_p1 = scmp.eq.s32.totalorder %s993_s25, 7  ;;  %s475_s29 = int_to_ptr.vmem [resolvable:$true] %s474_s29 }
  0x43   : > { %v332_v6 = vld [vmem:[#allocation8 + $0x18] sm:$0xff]  ;;  %420 = vmatpush.msra.mxu3 %v326_v3  ;;  %400 = vmatpush.msra.mxu2 %v325_v18  ;;  %v333_v19 = vld [vmem:[#allocation8 + $0x20] sm:$0xff]  ;;  %v331_v20 = vld [vmem:[#allocation8 + $0x10] sm:$0xff]  ;;  %s608_s14 = sshll.u32 %s993_s25, 1  ;;  %s462_s15 = sshll.u32 %s1097_s8, 4  ;;  %s463_s15 = int_to_ptr.vmem [resolvable:$true] %s462_s15 }
  0x44   : > { %374 = vmatpush.msra.mxu1 %v334_v5  ;;  %606 = vmatmul.msk.f32.vlgmr.msra.gmra.mxu3 %vm381_vm1, %v323_v4  ;;  %v425_v9 = vld [vmem:[%s1158_s4] sm:$0x3]  ;;  %v329_v21 = vld [vmem:[#allocation8] sm:$0xff]  ;;  %s460_s20 = scalar_lea.hbm %s1159_s5, %s608_s14  ;;  %s450_s27 = scalar_lea.sflag [#allocation4], %s1081_s13 }
  0x45   : > { %v428_v11 = vperm.slane %v425_v9, 1  ;;  %605 = vmatmul.msk.f32.vlgmr.msra.gmra.mxu2 %vm381_vm1, %v323_v4  ;;  %354 = vmatpush.msra.mxu0 %v333_v19  ;;  %v427_v30 = vperm.slane %v425_v9, 0  ;;  %s464_s16 = sshll.u32 %s460_s20, 4  ;;  %s871_s9 = scalar_lea.hbm %s1159_s5, 16  ;;  %s465_s16 = int_to_ptr.hbm [resolvable:$true] %s464_s16 }
  0x46   : > { %375 = vmatpush.msra.mxu1 %v332_v6  ;;  %v324_v8 = vld [vmem:[#allocation11] sm:$0x3]  ;;  %s865_s19 = sshra.s32 %s465_s16, 4  ;;  %s866_s19 = int_to_ptr.hbm [resolvable:$true] %s865_s19 }
  0x47   : > { %355 = vmatpush.msra.mxu0 %v331_v20  ;;  %s867_s26 = scalar_lea.hbm %s866_s19, 2  ;;  %p872_p10 = scmp.lt.s32.totalorder %s866_s19, %s1159_s5 }
  0x48   : > { %376 = vmatpush.msra.mxu1 %v330_v7  ;;  %p868_p4 = scmp.ne.s32.totalorder %s866_s19, %s867_s26  ;;  %p873_p11 = scmp.lt.s32.totalorder %s871_s9, %s867_s26 }
  0x49   : > { %604 = vmatmul.msk.f32.vlgmr.msra.gmra.mxu1 %vm337_vm2, %v324_v8  ;;  %356 = vmatpush.msra.mxu0 %v329_v21 }
  0x4a   : > { %603 = vmatmul.msk.f32.vlgmr.msra.gmra.mxu0 %vm337_vm2, %v324_v8  ;;  %p869_p8 = pnand %p868_p4, %p1054_p3  ;;  %p874_p12 = por %p873_p11, %p872_p10 }
  0x4c   : > { %p870_p9 = pneg %p869_p8 }
  0x4e   : > { %p875_p13 = pnand %p874_p12, %p870_p9 }
  0xc6   : > { %v378_v10 = vpop.f32.mrf.mxu1 }
  0xc7   : > { %v422_v12 = vpop.f32.mrf.mxu3  ;;  %v358_v27 = vpop.f32.mrf.mxu0 }
  0xc8   : > { %v423_v13 = vadd.f32 %v422_v12, %v378_v10  ;;  %v402_v28 = vpop.f32.mrf.mxu2 }
  0xc9   : > { %v403_v29 = vadd.f32 %v402_v28, %v358_v27 }
  0xca   : > { %v432_v14 = vadd.f32 %v428_v11, %v423_v13 }
  0xcb   : > { %v431_v31 = vadd.f32 %v427_v30, %v403_v29 }
  0xcc   : > { %v434_v15 = vsel %vm433_vm3, %v432_v14, -inf }
  0xcd   : > { %435 = vmax.xlane.f32.xlu0 %v434_v15  ;;  %448 = vst.msk [vmem:[#allocation11] sm:$0x3] %vm447_vm4, %v431_v31 }
  0xce   : > { %629 = dma.vmem_to_hbm [thread:$0]  (%p1169_p1), %s475_s29, 32, %s477_s10, [#allocation12]  }
 0x140   : > { %v436_v22 = vpop.xlane.xlu0 %435 }
 0x141   : > { %v437_v23 = vsub.f32 %v432_v14, %v436_v22 }
 0x143   : > { %v438_v24 = vmul.f32 1.442695, %v437_v23 }
 0x145   : > { %699 = vpow2.f32 %v438_v24 }
 0x14b   : > { %v700_v25 = vpop.eup %699 }
 0x14c   : > { %v440_v26 = vsel %vm433_vm3, %v700_v25, 0.0 }
 0x14d   : > { %441 = vadd.xlane.f32.xlu0 %v440_v26 }
 0x1c0   : > { %v442_v32 = vpop.xlane.xlu0 %441 }
 0x1c1   : > { %701 = vlog2.f32 %v442_v32 }
 0x1c7   : > { %v702_v33 = vpop.eup %701 }
 0x1c8   : > { %v444_v34 = vmul.f32 0.6931472, %v702_v33 }
 0x1ca   : > { %v445_v35 = vsub.f32 %v437_v23, %v444_v34 }
 0x1cc   : > { %446 = vst.msk [vmem:[%s1097_s8] sm:$0x3] %vm433_vm3, %v445_v35 }
 0x1cd   : > { %878 = shalt.err (!%p875_p13)
}
 0x1ce   : > { %627 = dma.vmem_to_hbm [thread:$0]  (%p1054_p3), %s463_s15, 32, %s465_s16, %s450_s27  }
 0x1cf   : > { %p1170_p0 = pmov %p1169_p1 }
 0x1d1   : > { %908 = dma.done.wait (%p1170_p0), [#allocation12], 32   ;;  %p1171_p5 = pmov %p1170_p0 }
 0x1d3   : > { %910 = vsyncadd (%p1171_p5), [#allocation12], 4294967264 }
 0x1d4 PF: > { %p660_p7 = scmp.ge.s32.totalorder %s929_s24, 2  ;;  %s493_s13 = sand.u32 1, %s917_s21  }
 0x1d5   : > { %s494_s8 = scalar_lea.sflag [#allocation4], %s493_s13 }
 0x1d6   : > { %p648_p2 = pnand %p660_p7, %p1007_p6 }
 0x1d8   : > { %p649_p1 = pneg %p648_p2 }
 0x1da   : > { %912 = dma.done.wait (%p649_p1), %s494_s8, 32  }
 0x1db   : > { %914 = vsyncadd (%p649_p1), %s494_s8, 4294967264  ;;  %p23_p3 = scmp.ge.s32.totalorder %s1041_s7, 10   ;;  %s1172_s21 = smov %s921_s22 }
 0x1dc   : > { %s1173_s22 = smov %s925_s23  ;;  %s1174_s23 = smov %s1050_s11 }
 0x1dd   : > { %s1175_s24 = smov %s1041_s7  ;;  %25 = sbr.rel (!%p23_p3) target bundleno = 8 (0x8), region = 109 }
 0x1e2   :  { %500 = vsyncpa [#allocation3], 1 }
 0x1e3   :  { %502 = vsyncpa [#allocation3 + $0x1], 1 }
 0x1e4   :  { %503 = vsyncpa [#allocation6], 1 }
 0x1e5   :  { %504 = vsyncpa [#allocation9], 1 }
 0x1e6   :  { %505 = vsyncpa [#allocation4], 1 }
 0x1e7   :  { %507 = vsyncpa [#allocation4 + $0x1], 1 }
 0x1e8   :  { %508 = vsyncpa [#allocation12], 1 }

</bundles_post_ra>
